<compile_context>
chip_gen: v7x
topology: tpu7x:2x2x1
jax: 0.10.0
libtpu: 0.0.40
codegen_flags: <defaults>
</compile_context>

<pallas_src>
import jax
import jax.numpy as jnp
from jax.experimental import pallas as pl
from jax.experimental.pallas import tpu as pltpu

EPS = 1e-4  # matches the PyTorch default eps=0.0001


# ---------------------------------------------------------------------------
# Pallas kernel: weighted Procrustes statistics for a block of Bb batches.
# ---------------------------------------------------------------------------
def _procrustes_stats_kernel(xyw_ref, out_ref):
    # xyw_ref : [Bb, 8, n]  packed (rows 0:3 = X, 3:6 = Y, 6 = w, 7 = pad)
    # out_ref : [Bb, 3, 5]  (cols 0:3 = Sxy, col 3 = mean_X, col 4 = mean_Y)
    xyw = xyw_ref[...]                                    # single tile load
    x = xyw[:, 0:3, :]                                    # [Bb, 3, n]
    y = xyw[:, 3:6, :]                                    # [Bb, 3, n]
    w = xyw[:, 6:7, :]                                    # [Bb, 1, n]

    # W1 = sum |w| (per-batch scalar); one exact reciprocal instead of n divides.
    w1 = jnp.sum(jnp.abs(w), axis=-1, keepdims=True)      # [Bb, 1, 1]
    inv = 1.0 / (w1 + EPS)                                # exact: parity with eps=1e-4
    w_norm = w * inv                                      # [Bb, 1, n]

    # Weighted means.
    mean_x = jnp.sum(w_norm * x, axis=-1, keepdims=True)  # [Bb, 3, 1]
    mean_y = jnp.sum(w_norm * y, axis=-1, keepdims=True)  # [Bb, 3, 1]

    # Sxy[b,i,j] = sum_n (y[b,i,n]-mY[b,i]) * w_norm[b,n] * (x[b,j,n]-mX[b,j])
    # Computed on the VPU/XLU in full f32: 3 broadcast multiplies + lane
    # reductions.  No MXU push -> no [3,n] relayout, no matmul-precision loss.
    xc = w_norm * (x - mean_x)                            # [Bb, 3, n]
    yc = y - mean_y                                       # [Bb, 3, n]
    rows = [jnp.sum(yc[:, i:i + 1, :] * xc, axis=-1)[:, None, :]  # [Bb, 1, 3]
            for i in range(3)]
    sxy = jnp.concatenate(rows, axis=1)                   # [Bb, 3, 3]

    # Single packed output block: one write-back DMA per grid step.
    out_ref[...] = jnp.concatenate([sxy, mean_x, mean_y], axis=-1)


# ---------------------------------------------------------------------------
# VMEM-aware grid selection.
# ---------------------------------------------------------------------------
def _vmem_capacity_bytes():
    """Generation-aware VMEM capacity; conservative fallback = 64 MiB (v7x per-TC)."""
    try:
        info = pltpu.get_tpu_info()
        cap = getattr(info, "vmem_capacity_bytes", None)
        if cap:
            return int(cap)
    except Exception:
        pass
    return 64 * 1024 * 1024


def _step_vmem_bytes(bb, n):
    """Real double-buffered footprint of one grid step (padded to (8,128) tiles)."""
    n_pad = -(-n // 128) * 128
    in_bytes = bb * 8 * n_pad * 4      # packed [bb, 8, n] f32 input tile (8 sublanes exact)
    out_bytes = bb * 8 * 128 * 4       # [bb, 3, 5] output tile, padded to (8, 128)
    return 2 * (in_bytes + out_bytes)  # x2: double-buffered pipeline


def _choose_num_steps(B, n, budget_bytes):
    """>=2 steps when B>=2 (v7x has 2 TensorCores), growing only until the
    per-step slab fits the per-generation VMEM budget (fewer, larger steps
    follow the measured tile-size-vs-roofline curve on v5e/v6e)."""
    num_steps = 2 if B >= 2 else 1
    while True:
        bb = -(-B // num_steps)
        if bb == 1 or _step_vmem_bytes(bb, n) <= budget_bytes:
            return num_steps
        num_steps *= 2


def procrustes_stats(packed):
    """packed: [B, 8, n] float32 (rows 0:3 = X, 3:6 = Y, 6 = w, 7 = pad).
    Returns Sxy [B,3,3], mean_X [B,3,1], mean_Y [B,3,1]."""
    B, _, n = packed.shape
    capacity = _vmem_capacity_bytes()
    budget = int(0.4 * capacity)           # leave headroom for compiler scratch
    num_steps = _choose_num_steps(B, n, budget)
    Bb = pl.cdiv(B, num_steps)
    B_pad = Bb * num_steps
    if B_pad != B:
        # Padded batches have w == 0 -> all stats are exactly 0 (1/eps finite, no NaNs).
        packed = jnp.pad(packed, ((0, B_pad - B), (0, 0), (0, 0)))

    # TODO(synk): for B == 1 with very large n (k ~ 1e5+), split the n axis into
    # parallel partial-sum blocks (uncentered accumulation) and combine in JAX.

    vmem_limit = int(min(capacity - (4 << 20),
                         max(_step_vmem_bytes(Bb, n) + (16 << 20), 32 << 20)))

    out = pl.pallas_call(
        _procrustes_stats_kernel,
        out_shape=jax.ShapeDtypeStruct((B_pad, 3, 5), jnp.float32),
        grid_spec=pltpu.PrefetchScalarGridSpec(
            num_scalar_prefetch=0,
            grid=(num_steps,),
            in_specs=[pl.BlockSpec((Bb, 8, n), lambda s: (s, 0, 0))],
            out_specs=pl.BlockSpec((Bb, 3, 5), lambda s: (s, 0, 0)),
        ),
        compiler_params=pltpu.CompilerParams(
            dimension_semantics=("parallel",),
            vmem_limit_bytes=vmem_limit),
    )(packed)

    out = out[:B]
    sxy = out[:, :, 0:3]
    mean_x = out[:, :, 3:4]
    mean_y = out[:, :, 4:5]
    return sxy, mean_x, mean_y


# ---------------------------------------------------------------------------
# Full forward pass (glue in plain JAX + Pallas kernel for the stats).
# ---------------------------------------------------------------------------
def soft_procrustes_forward(conf_matrix, src_pcd, tgt_pcd, *,
                            sample_rate, max_condition_num):
    """
    conf_matrix : [B, N, M] float32
    src_pcd     : [B, N, 3] float32
    tgt_pcd     : [B, M, 3] float32
    Returns (R, t, R_forwd, t_forwd, condition, solution_mask), mirroring the
    PyTorch module with src_mask/tgt_mask = None.
    """
    B, N, M = conf_matrix.shape

    # src_mask / tgt_mask are None: src_len = N, tgt_len = M.
    # entry_max = int(max(N, M) * sample_rate); sample_n_points = entry_max.
    # TODO(synk): dynamic masks would make sample_n_points data-dependent,
    # which cannot be expressed with static shapes; only the mask-free path
    # of the reference module is implemented (w_mask is then all-True, so the
    # reference's w[~w_mask]=0 is a no-op and is omitted).
    k = int(max(N, M) * sample_rate)

    # Top-k (== descending sort + slice) over the flattened confidence matrix.
    conf_flat = conf_matrix.reshape(B, N * M)
    w, idx = jax.lax.top_k(conf_flat, k)                       # [B, k], [B, k]
    idx_src = idx // M
    idx_tgt = idx % M

    # Row-gather only the k sampled points (no full-cloud [B,3,N]/[B,3,M]
    # transpose is ever materialized), then build the packed coord-major slab
    # [B, 8, k] consumed by the Pallas kernel in a single DMA stream.
    xs = jnp.take_along_axis(src_pcd.astype(jnp.float32),
                             idx_src[:, :, None], axis=1)      # [B, k, 3]
    ys = jnp.take_along_axis(tgt_pcd.astype(jnp.float32),
                             idx_tgt[:, :, None], axis=1)      # [B, k, 3]
    packed = jnp.concatenate(
        [xs, ys, w.astype(jnp.float32)[:, :, None],
         jnp.zeros((B, k, 1), jnp.float32)], axis=-1)          # [B, k, 8]
    packed = jnp.transpose(packed, (0, 2, 1))                  # [B, 8, k]
    # TODO(synk): fuse the gather itself into the Pallas kernel (idx as int32
    # inputs + in-kernel gather) so the sampled slab never round-trips HBM.
    # TODO(synk): optionally DMA the slab as bfloat16 (upcast in-kernel) when
    # k is large and the accuracy budget allows; kept f32 for SVD-gate parity.

    sxy, mean_x, mean_y = procrustes_stats(packed)

    # 3x3 batched SVD + det correction (plain JAX; no clean Pallas equivalent).
    # TODO(synk): PyTorch does this in float64; TPU path stays in float32, so
    # near-degenerate Sxy (condition ~ max_condition_num) may flip the mask.
    U, D, Vh = jnp.linalg.svd(sxy)                 # sxy = U @ diag(D) @ Vh
    # Note: if a batch has D.min == 0 this is inf (or NaN when Sxy == 0);
    # either way `condition < max_condition_num` is False -> mask is safe.
    condition = D.max(axis=1) / D.min(axis=1)
    uv_det = jnp.linalg.det(U) * jnp.linalg.det(Vh)  # det(V) == det(Vh)
    S = jnp.tile(jnp.eye(3, dtype=jnp.float32)[None], (B, 1, 1))
    S = S.at[:, 2, 2].set(uv_det)
    R = (U @ S @ Vh).astype(jnp.float32)           # [B, 3, 3]
    t = mean_y - R @ mean_x                        # [B, 3, 1]

    # TODO(synk): the PyTorch try/except SVD-failure fallback is not
    # reproducible in JAX (no exceptions from device code).

    solution_mask = condition < max_condition_num
    eye = jnp.tile(jnp.eye(3, dtype=jnp.float32)[None], (B, 1, 1))
    zeros_t = jnp.zeros((B, 3, 1), dtype=jnp.float32)
    R_forwd = jnp.where(solution_mask[:, None, None], R, eye)
    t_forwd = jnp.where(solution_mask[:, None, None], t, zeros_t)
    return R, t, R_forwd, t_forwd, condition, solution_mask


# ---------------------------------------------------------------------------
if __name__ == "__main__":
    # Deterministic "config" (the module has no learnable weights).
    sample_rate = 0.5
    max_condition_num = 1.0e3

    key = jax.random.PRNGKey(0)
    k1, k2, k3 = jax.random.split(key, 3)
    B, N, M = 2, 256, 256
    conf_matrix = jax.random.uniform(k1, (B, N, M), dtype=jnp.float32)
    src_pcd = jax.random.normal(k2, (B, N, 3), dtype=jnp.float32)
    tgt_pcd = jax.random.normal(k3, (B, M, 3), dtype=jnp.float32)

    R, t, R_forwd, t_forwd, condition, solution_mask = soft_procrustes_forward(
        conf_matrix, src_pcd, tgt_pcd,
        sample_rate=sample_rate, max_condition_num=max_condition_num)

    jax.block_until_ready((R, t, R_forwd, t_forwd, condition, solution_mask))
    assert R.shape == (B, 3, 3) and t.shape == (B, 3, 1)
    assert R_forwd.shape == (B, 3, 3) and t_forwd.shape == (B, 3, 1)
    assert condition.shape == (B,) and solution_mask.shape == (B,)
    assert bool(jnp.all(jnp.isfinite(R))) and bool(jnp.all(jnp.isfinite(t)))
    print("KERNEL_OK")
</pallas_src>

<mosaic_0001>
module attributes {stable_mosaic.version = 11 : i64} {
  func.func @_procrustes_stats_kernel(%arg0: i32, %arg1: memref<1x8x128xf32, #tpu.memory_space<vmem>>, %arg2: memref<1x3x5xf32, #tpu.memory_space<vmem>>) attributes {dimension_semantics = [#tpu.dimension_semantics<parallel>], iteration_bounds = array<i64: 2>, scalar_prefetch = 0 : i64, scratch_operands = 0 : i64, tpu.core_type = #tpu.core_type<tc>, window_params = [{transform_indices = @transform_0, window_bounds = array<i64: 1, 8, 128>}, {transform_indices = @transform_1, window_bounds = array<i64: 1, 3, 5>}]} {
    %c0 = arith.constant 0 : index
    %c0_0 = arith.constant 0 : index
    %c0_1 = arith.constant 0 : index
    %0 = vector.load %arg1[%c0, %c0_0, %c0_1] : memref<1x8x128xf32, #tpu.memory_space<vmem>>, vector<1x8x128xf32>
    %1 = vector.extract_strided_slice %0 {offsets = [0, 0, 0], sizes = [1, 3, 128], strides = [1, 1, 1]} : vector<1x8x128xf32> to vector<1x3x128xf32>
    %2 = vector.extract_strided_slice %0 {offsets = [0, 3, 0], sizes = [1, 3, 128], strides = [1, 1, 1]} : vector<1x8x128xf32> to vector<1x3x128xf32>
    %3 = vector.extract_strided_slice %0 {offsets = [0, 6, 0], sizes = [1, 1, 128], strides = [1, 1, 1]} : vector<1x8x128xf32> to vector<1x1x128xf32>
    %4 = math.absf %3 : vector<1x1x128xf32>
    %cst = arith.constant dense<0.000000e+00> : vector<1x1xf32>
    %5 = vector.multi_reduction <add>, %4, %cst [2] : vector<1x1x128xf32> to vector<1x1xf32>
    %6 = vector.shape_cast %5 : vector<1x1xf32> to vector<1x1x1xf32>
    %cst_2 = arith.constant 9.99999974E-5 : f32
    %7 = vector.broadcast %cst_2 : f32 to vector<1x1x1xf32>
    %8 = arith.addf %6, %7 : vector<1x1x1xf32>
    %cst_3 = arith.constant 1.000000e+00 : f32
    %9 = vector.broadcast %cst_3 : f32 to vector<1x1x1xf32>
    %10 = arith.divf %9, %8 : vector<1x1x1xf32>
    %11 = vector.broadcast %10 : vector<1x1x1xf32> to vector<1x1x128xf32>
    %12 = arith.mulf %3, %11 : vector<1x1x128xf32>
    %13 = vector.broadcast %12 : vector<1x1x128xf32> to vector<1x3x128xf32>
    %14 = arith.mulf %13, %1 : vector<1x3x128xf32>
    %cst_4 = arith.constant dense<0.000000e+00> : vector<1x3xf32>
    %15 = vector.multi_reduction <add>, %14, %cst_4 [2] : vector<1x3x128xf32> to vector<1x3xf32>
    %16 = vector.shape_cast %15 : vector<1x3xf32> to vector<1x3x1xf32>
    %17 = vector.broadcast %12 : vector<1x1x128xf32> to vector<1x3x128xf32>
    %18 = arith.mulf %17, %2 : vector<1x3x128xf32>
    %cst_5 = arith.constant dense<0.000000e+00> : vector<1x3xf32>
    %19 = vector.multi_reduction <add>, %18, %cst_5 [2] : vector<1x3x128xf32> to vector<1x3xf32>
    %20 = vector.shape_cast %19 : vector<1x3xf32> to vector<1x3x1xf32>
    %21 = vector.broadcast %16 : vector<1x3x1xf32> to vector<1x3x128xf32>
    %22 = arith.subf %1, %21 : vector<1x3x128xf32>
    %23 = vector.broadcast %12 : vector<1x1x128xf32> to vector<1x3x128xf32>
    %24 = arith.mulf %23, %22 : vector<1x3x128xf32>
    %25 = vector.broadcast %20 : vector<1x3x1xf32> to vector<1x3x128xf32>
    %26 = arith.subf %2, %25 : vector<1x3x128xf32>
    %27 = vector.extract_strided_slice %26 {offsets = [0, 0, 0], sizes = [1, 1, 128], strides = [1, 1, 1]} : vector<1x3x128xf32> to vector<1x1x128xf32>
    %28 = vector.broadcast %27 : vector<1x1x128xf32> to vector<1x3x128xf32>
    %29 = arith.mulf %28, %24 : vector<1x3x128xf32>
    %cst_6 = arith.constant dense<0.000000e+00> : vector<1x3xf32>
    %30 = vector.multi_reduction <add>, %29, %cst_6 [2] : vector<1x3x128xf32> to vector<1x3xf32>
    %31 = vector.shape_cast %30 : vector<1x3xf32> to vector<1x1x3xf32>
    %32 = vector.extract_strided_slice %26 {offsets = [0, 1, 0], sizes = [1, 1, 128], strides = [1, 1, 1]} : vector<1x3x128xf32> to vector<1x1x128xf32>
    %33 = vector.broadcast %32 : vector<1x1x128xf32> to vector<1x3x128xf32>
    %34 = arith.mulf %33, %24 : vector<1x3x128xf32>
    %cst_7 = arith.constant dense<0.000000e+00> : vector<1x3xf32>
    %35 = vector.multi_reduction <add>, %34, %cst_7 [2] : vector<1x3x128xf32> to vector<1x3xf32>
    %36 = vector.shape_cast %35 : vector<1x3xf32> to vector<1x1x3xf32>
    %37 = vector.extract_strided_slice %26 {offsets = [0, 2, 0], sizes = [1, 1, 128], strides = [1, 1, 1]} : vector<1x3x128xf32> to vector<1x1x128xf32>
    %38 = vector.broadcast %37 : vector<1x1x128xf32> to vector<1x3x128xf32>
    %39 = arith.mulf %38, %24 : vector<1x3x128xf32>
    %cst_8 = arith.constant dense<0.000000e+00> : vector<1x3xf32>
    %40 = vector.multi_reduction <add>, %39, %cst_8 [2] : vector<1x3x128xf32> to vector<1x3xf32>
    %41 = vector.shape_cast %40 : vector<1x3xf32> to vector<1x1x3xf32>
    %42 = tpu.concatenate %31, %36, %41 in 1 : vector<1x1x3xf32>, vector<1x1x3xf32>, vector<1x1x3xf32> -> vector<1x3x3xf32>
    %43 = tpu.concatenate %42, %16, %20 in 2 : vector<1x3x3xf32>, vector<1x3x1xf32>, vector<1x3x1xf32> -> vector<1x3x5xf32>
    %c0_9 = arith.constant 0 : index
    %c0_10 = arith.constant 0 : index
    %c0_11 = arith.constant 0 : index
    %44 = vector.load %arg2[%c0_9, %c0_10, %c0_11] : memref<1x3x5xf32, #tpu.memory_space<vmem>>, vector<1x3x5xf32>
    tpu.vector_store %arg2[%c0_9, %c0_10, %c0_11], %43 {strides = array<i32>} : memref<1x3x5xf32, #tpu.memory_space<vmem>>, vector<1x3x5xf32>,
    return
  }
  func.func @transform_0(%arg0: i32) -> (i32, i32, i32) {
    %c0_i32 = arith.constant 0 : i32
    %c0_i32_0 = arith.constant 0 : i32
    %c0_i32_1 = arith.constant 0 : i32
    return %arg0, %c0_i32, %c0_i32_0 : i32, i32, i32
  }
  func.func @transform_1(%arg0: i32) -> (i32, i32, i32) {
    %c0_i32 = arith.constant 0 : i32
    %c0_i32_0 = arith.constant 0 : i32
    %c0_i32_1 = arith.constant 0 : i32
    return %arg0, %c0_i32, %c0_i32_0 : i32, i32, i32
  }
}

</mosaic_0001>

<bundles_post_ra>
// kernel: tpu_custom_call.1
= control target key start
LH: loop header
LB: loop body
LE: loop exit
PB: predicated region body
PF: predicated region fallthrough
CT: control target
= control target key end

     0   :  { %6 = vsyncpa [#allocation3], 0  ;;  %s519_s0 = inlined_call_operand.hbm [shape: f32[2,8,128], index: 0, kind: input, shape index: {}]   ;;  %s520_s1 = inlined_call_operand.vmem [shape: f32[2,3,5], index: 1, kind: output, shape index: {}]  }
   0x1   :  { %8 = vsyncpa [#allocation3 + $0x1], 0  ;;  %s408_s6 = smov 0   ;;  %s410_s7 = smov 0  }
   0x2   :  { %s412_s8 = smov 0   ;;  %s414_s9 = smov 0  }
   0x3 LB: > { %s427_s10 = sadd.s32 4294967295, %s395_s9   ;;  %s430_s11 = sadd.s32 1, %s395_s9   ;;  %s395_s9 = sphi %s414_s9, %s528_s9   ;;  %s391_s8 = sphi %s412_s8, %s527_s8   ;;  %s387_s7 = sphi %s410_s7, %s526_s7   ;;  %s383_s6 = sphi %s408_s6, %s525_s6  }
   0x4   : > { %s18_s12 = ssub.s32 %s395_s9, %s430_s11  ;;  %s21_s13 = sadd.s32 1, %s391_s8 }
   0x5   : > { %p19_p0 = scmp.eq.s32.totalorder %s18_s12, 0  ;;  %p28_p1 = scmp.ne.s32.totalorder %s391_s8, %s387_s7 }
   0x6   : > { %p29_p2 = scmp.eq.s32.totalorder %s395_s9, 0  ;;  %p34_p3 = scmp.ne.s32.totalorder %s387_s7, %s383_s6 }
   0x7   : > { %s440_s14 = scalar_select %p19_p0, %s391_s8, %s21_s13  }
   0x8   : > { %p30_p4 = por %p29_p2, %p28_p1  ;;  %p35_p5 = scmp.eq.s32.totalorder %s427_s10, 0 }
   0x9   : > { %p296_p6 = scmp.lt.s32.totalorder %s395_s9, 2  ;;  %s84_s16 = sand.u32 1, %s391_s8  }
   0xa   : > { %p444_p7 = por %p35_p5, %p34_p3  ;;  %s283_s17 = sshll.u32 %s84_s16, 3 }
   0xb   : > { %s284_s18 = sshll.u32 %s395_s9, 7  ;;  %s88_s22 = scalar_lea.vmem [#allocation2], %s283_s17 }
   0xc   : > { %s453_s21 = scalar_lea.hbm %s519_s0, %s284_s18  ;;  %s95_s23 = sshll.u32 %s88_s22, 4  ;;  %s455_s23 = int_to_ptr.vmem [resolvable:$true] %s95_s23 }
   0xd   : > { %p457_p8 = pnand %p296_p6, %p30_p4  ;;  %s85_s25 = scalar_lea.sflag [#allocation3], %s84_s16 }
   0xe   : > { %s331_s26 = scalar_lea.hbm %s453_s21, 128  ;;  %s336_s29 = scalar_lea.hbm %s519_s0, 256 }
   0xf   : > { %p332_p11 = scmp.ne.s32.totalorder %s453_s21, %s331_s26  ;;  %p333_p12 = pneg %p457_p8 }
  0x10   : > { %p337_p1 = scmp.lt.u32.totalorder %s453_s21, %s519_s0  ;;  %p338_p2 = scmp.lt.u32.totalorder %s336_s29, %s331_s26 }
  0x11   : > { %p334_p13 = pnand %p333_p12, %p332_p11  ;;  %p340_p4 = scmp.lt.u32.totalorder %s331_s26, %s453_s21 }
  0x12   : > { %p339_p3 = por %p338_p2, %p337_p1 }
  0x13   : > { %p335_p0 = pneg %p334_p13 }
  0x14   : > { %p341_p5 = por %p340_p4, %p339_p3 }
  0x16   : > { %p342_p6 = pnand %p341_p5, %p335_p0 }
  0x18   : > { %345 = shalt.err (!%p342_p6)
}
  0x19   : > { %s346_s3 = scalar_lea.vmem %s455_s23, 128  ;;  %s397_s4 = smov [#allocation2]  }
  0x1a   : > { %p347_p11 = scmp.ne.s32.totalorder %s455_s23, %s346_s3  ;;  %s351_s5 = sshll.u32 %s397_s4, 4  ;;  %s352_s5 = int_to_ptr.vmem [resolvable:$false] %s351_s5 }
  0x1b   : > { %s353_s6 = scalar_lea.vmem %s352_s5, 256  ;;  %p354_p10 = scmp.lt.s32.totalorder %s455_s23, %s352_s5 }
  0x1c   : > { %p349_p13 = pnand %p347_p11, %p333_p12  ;;  %p355_p1 = scmp.lt.s32.totalorder %s353_s6, %s346_s3 }
  0x1e   : > { %p350_p9 = pneg %p349_p13  ;;  %p356_p2 = por %p355_p1, %p354_p10 }
  0x20   : > { %p357_p3 = pnand %p356_p2, %p350_p9 }
  0x22   : > { %360 = shalt.err (!%p357_p3)
}
  0x23   : > { %295 = dma.hbm_to_vmem [thread:$0]  (!%p457_p8), %s453_s21, 128, %s455_s23, %s85_s25  }
  0x24   : > { %p523_p0 = scmp.lt.s32.totalorder %s395_s9, 3  ;;  %p524_p4 = scmp.ge.s32.totalorder %s395_s9, 1 }
  0x26   : > { %p101_p12 = pnand %p524_p4, %p523_p0 }
  0x27   : > { %s106_s12 = sand.u32 (!%p101_p12), 1, %s387_s7  }
  0x28   : > { %104 = sbr.rel (%p101_p12) target bundleno = 515 (0x203), region = 24  ;;  %s286_s13 = sshll.u32 (!%p101_p12), %s106_s12, 3 }
  0x29   : > { %s107_s16 = scalar_lea.sflag (!%p101_p12), [#allocation3], %s106_s12  ;;  %s110_s17 = scalar_lea.vmem (!%p101_p12), [#allocation2], %s286_s13 }
  0x2f   : > { %378 = dma.done.wait (%p444_p7), %s107_s16, 128  }
  0x30   : > { %380 = vsyncadd (%p444_p7), %s107_s16, 4294967168  ;;  %v132_v0 = vld [vmem:[%s110_s17] sm:$0xff]  ;;  %vm134_vm0 = vcmask 1046534   ;;  %v142_v5 = vlaneseq  ;;  %vm151_vm1 = vcmask 1045507   ;;  %vm147_vm2 = vcmask 1042432   ;;  %p128_p7 = scmp.lt.s32.totalorder %s427_s10, 1 }
  0x31   : > { %v133_v1 = vand.u32 2147483647, %v132_v0  ;;  %vm202_vm3 = vcmask 1040384   ;;  %vm204_vm4 = vcmask 1041408   ;;  %vm209_vm5 = vcmask 23552  }
  0x32   : > { %v143_v6 = vshrl.u32 %v142_v5, 7  ;;  %v184_v31 = vand.u32 127, %v142_v5  ;;  %s530_s10 = smov (!%p128_p7, %s427_s10), 1  ;;  %vm211_vm6 = vcmask 31744   ;;  %vm213_vm7 = vcmask 34816  }
  0x33   : > { %v135_v2 = vsel %vm134_vm0, %v133_v1, 0.0  ;;  %s287_s9 = sshll.u32 %s530_s10, 2 }
  0x34   : > { %136 = vadd.xlane.f32.xlu0 %v135_v2  ;;  %v144_v7 = vsub.s32 6, %v143_v6  ;;  %v168_v14 = vsub.s32 4, %v143_v6  ;;  %v160_v15 = vsub.s32 3, %v143_v6  ;;  %v176_v16 = vsub.s32 5, %v143_v6  ;;  %s131_s19 = scalar_lea.vmem %s520_s1, %s287_s9 }
  0x35   : > { %v187_v32 = vsub.s32 %v184_v31, %v143_v6 }
  0xc1   : > { %v137_v3 = vpop.xlane.xlu0 %136 }
  0xc2   : > { %v138_v4 = vadd.f32 0.0001, %v137_v3 }
  0xc4   : > { %329 = vrcp.f32 %v138_v4 }
  0xce   : > { %v330_v8 = vpop.eup %329 }
  0xcf   : > { %v141_v9 = vmul.f32 %v330_v8, %v132_v0 }
  0xd1   : > { %v145_v10 = vrot.slane %v141_v9, %v144_v7 }
  0xd3   : > { %v146_v11 = vmul.f32 %v145_v10, %v132_v0 }
  0xd5   : > { %v152_v12 = vsel %vm151_vm1, %v146_v11, 0.0  ;;  %v148_v13 = vsel %vm147_vm2, %v146_v11, 0.0 }
  0xd6   : > { %153 = vadd.xlane.f32.xlu1 %v152_v12  ;;  %149 = vadd.xlane.f32.xlu0 %v148_v13 }
 0x163   : > { %v154_v17 = vpop.xlane.xlu1 %153  ;;  %v150_v18 = vpop.xlane.xlu0 %149 }
 0x164   : > { %v157_v19 = vsub.f32 %v132_v0, %v154_v17  ;;  %v155_v20 = vsub.f32 %v132_v0, %v150_v18  ;;  %v207_v40 = vrot.slane %v154_v17, 3 }
 0x166   : > { %v156_v21 = vmul.f32 %v155_v20, %v145_v10  ;;  %v169_v22 = vrot.slane %v157_v19, %v168_v14  ;;  %v161_v23 = vrot.slane %v157_v19, %v160_v15  ;;  %v177_v24 = vrot.slane %v157_v19, %v176_v16 }
 0x168   : > { %v170_v25 = vmul.f32 %v169_v22, %v156_v21  ;;  %v162_v26 = vmul.f32 %v161_v23, %v156_v21  ;;  %v178_v29 = vmul.f32 %v177_v24, %v156_v21 }
 0x16a   : > { %v171_v27 = vsel %vm147_vm2, %v170_v25, 0.0  ;;  %v163_v28 = vsel %vm147_vm2, %v162_v26, 0.0  ;;  %v179_v30 = vsel %vm147_vm2, %v178_v29, 0.0 }
 0x16b   : > { %172 = vadd.xlane.f32.xlu0 %v171_v27  ;;  %164 = vadd.xlane.f32.xlu1 %v163_v28 }
 0x16f   : > { %180 = vadd.xlane.f32.xlu1 %v179_v30 }
 0x1f8   : > { %v173_v33 = vpop.xlane.xlu0 %172  ;;  %v165_v34 = vpop.xlane.xlu1 %164 }
 0x1f9   : > { %v194_v35 = vrot.slane %v173_v33, %v187_v32  ;;  %v188_v36 = vrot.slane %v165_v34, %v187_v32 }
 0x1fb   : > { %v203_v39 = vsel %vm202_vm3, %v188_v36, %v194_v35 }
 0x1fc   : > { %v181_v37 = vpop.xlane.xlu1 %180 }
 0x1fd   : > { %v200_v38 = vrot.slane %v181_v37, %v187_v32 }
 0x1ff   : > { %v205_v41 = vsel %vm204_vm4, %v203_v39, %v200_v38 }
 0x200   : > { %v210_v42 = vsel %vm209_vm5, %v205_v41, %v150_v18 }
 0x201   : > { %v212_v43 = vsel %vm211_vm6, %v210_v42, %v207_v40 }
 0x202   : > { %214 = vst.msk [vmem:[%s131_s19] sm:$0x7] %vm213_vm7, %v212_v43 }
 0x203 PF: > { %p11_p8 = scmp.ge.s32.totalorder %s430_s11, 4   ;;  %s525_s6 = smov %s387_s7 }
 0x204   : > { %s526_s7 = smov %s391_s8  ;;  %s527_s8 = smov %s440_s14 }
 0x205   : > { %s528_s9 = smov %s430_s11  ;;  %13 = sbr.rel (!%p11_p8) target bundleno = 3 (0x3), region = 64 }
 0x20c   :  { %234 = vsyncpa [#allocation3], 1 }
 0x20d   :  { %236 = vsyncpa [#allocation3 + $0x1], 1 }

</bundles_post_ra>
